<compile_context>
chip_gen: v5e
topology: v5e:2x2
jax: 0.10.0
libtpu: 0.0.40
codegen_flags: <defaults>
</compile_context>

<pallas_src>
import jax
import jax.numpy as jnp
from jax.experimental import pallas as pl
from jax.experimental.pallas import tpu as pltpu


def _round_up(x, m):
    return ((x + m - 1) // m) * m


def dense_relu_kernel(x_ref, w_ref, b_ref, o_ref):
    # out = relu(x @ W + b)   (dropout in eval mode == identity)
    y = jnp.dot(x_ref[...], w_ref[...], preferred_element_type=jnp.float32)
    y = y + b_ref[...]                                   # broadcast (1, tn)
    o_ref[...] = jnp.maximum(y, 0.0).astype(o_ref.dtype)


def prepare_dense_relu_params(w, b):
    """One-time parameter prep (cache at init; do NOT redo per forward call).

    w: (out_ch, in_ch) like nn.Linear.weight; b: (out_ch,).
    Returns (wt, b2, out_ch): weight transposed + zero-padded to (in_ch, out_p),
    bias padded to (1, out_p), where out_p is a multiple of 128 (lane-dense stores).
    """
    out_ch, in_ch = w.shape
    out_p = _round_up(out_ch, 128)
    wt = jnp.zeros((in_ch, out_p), w.dtype).at[:, :out_ch].set(w.T)
    b2 = jnp.zeros((1, out_p), b.dtype).at[:, :out_ch].set(b)
    return wt, b2, out_ch


def _vmem_budget_bytes():
    try:
        cap = pltpu.get_tpu_info().vmem_capacity_bytes
    except Exception:
        cap = 64 * 1024 * 1024          # conservative (v7x per-TC size)
    return cap // 2                     # leave headroom for compiler scratch etc.


def dense_relu(x, wt, b2, out_ch, *, max_block_b=1024, max_weight_tile_bytes=4 << 20):
    """x: (B, in_ch); (wt, b2, out_ch) from prepare_dense_relu_params."""
    B, in_ch = x.shape
    in_ch_w, out_p = wt.shape
    assert in_ch_w == in_ch
    itemsize = jnp.dtype(x.dtype).itemsize
    budget = _vmem_budget_bytes()

    # ---- choose tn (output-lane tile): keep whole weight resident if it fits ----
    weight_bytes = in_ch * out_p * itemsize
    if weight_bytes <= min(budget // 3, 16 << 20):
        tn = out_p
    else:
        tn = max(128, ((max_weight_tile_bytes // (in_ch * itemsize)) // 128) * 128)
        tn = min(tn, out_p)
    nn = pl.cdiv(out_p, tn)
    weight_resident = (nn == 1)
    w_bufs = 1 if weight_resident else 2    # single-buffer grid-invariant operands

    # ---- choose tb (batch tile) against the per-generation VMEM budget ----
    fixed = w_bufs * (in_ch * tn + 8 * tn) * itemsize      # weight + (padded) bias
    per_row = 2 * (in_ch + tn) * itemsize                  # double-buffered x + out
    tb = max(8, min(max_block_b, (budget - fixed) // per_row))
    tb = (tb // 8) * 8
    if B <= tb:
        tb = B                       # full-dim block is always a legal block shape
    nb = pl.cdiv(B, tb)
    # v7x megacore: prefer >= 2 grid steps when B allows it
    if nb * nn == 1 and B >= 16:
        tb = max(8, ((tb // 2) // 8) * 8)
        nb = pl.cdiv(B, tb)

    vmem_need = fixed + 2 * tb * (in_ch + tn) * itemsize
    vmem_limit = int(min(max(vmem_need + (4 << 20), 8 << 20), 2 * budget))

    w_kwargs = dict(pipeline_mode=pl.Buffered(1)) if weight_resident else {}

    cost = pl.CostEstimate(
        flops=2 * B * in_ch * out_ch,
        bytes_accessed=(B * in_ch + in_ch * out_p + out_p + B * out_p) * itemsize,
        transcendentals=0,
    )

    out = pl.pallas_call(
        dense_relu_kernel,
        out_shape=jax.ShapeDtypeStruct((B, out_p), x.dtype),
        grid=(nb, nn),
        in_specs=[
            pl.BlockSpec((tb, in_ch), lambda i, j: (i, 0)),              # x: marches over B
            pl.BlockSpec((in_ch, tn), lambda i, j: (0, j), **w_kwargs),  # weight tile / resident
            pl.BlockSpec((1, tn), lambda i, j: (0, j), **w_kwargs),      # bias tile / resident
        ],
        out_specs=pl.BlockSpec((tb, tn), lambda i, j: (i, j)),
        compiler_params=pltpu.CompilerParams(
            dimension_semantics=("parallel", "parallel"),
            vmem_limit_bytes=vmem_limit,
        ),
        cost_estimate=cost,
    )(x, wt, b2)

    return out[:, :out_ch]


if __name__ == "__main__":
    # Small shapes implied by the module: batch=8, in_ch=32, out_ch=64
    B, in_ch, out_ch = 8, 32, 64
    key = jax.random.PRNGKey(0)
    kx, kw, kb = jax.random.split(key, 3)

    x = jax.random.normal(kx, (B, in_ch), dtype=jnp.float32)
    # Deterministic params (nn.Linear shapes: (out_ch, in_ch), (out_ch,))
    bound = 1.0 / jnp.sqrt(jnp.float32(in_ch))
    w = jax.random.uniform(kw, (out_ch, in_ch), jnp.float32, -bound, bound)
    b = jax.random.uniform(kb, (out_ch,), jnp.float32, -bound, bound)

    # One-time parameter prep (hoisted out of the per-call path).
    wt, b2, oc = prepare_dense_relu_params(w, b)

    out = dense_relu(x, wt, b2, oc)
    jax.block_until_ready(out)

    # Reference check (plain JAX, eval-mode dropout == identity)
    ref = jnp.maximum(x @ w.T + b, 0.0)
    assert out.shape == (B, out_ch)
    assert jnp.allclose(out, ref, atol=1e-5, rtol=1e-5)

    print("KERNEL_OK")
</pallas_src>

<mosaic_0001>
module attributes {stable_mosaic.version = 11 : i64} {
  func.func @dense_relu_kernel(%arg0: i32, %arg1: i32, %arg2: memref<8x32xf32, #tpu.memory_space<vmem>>, %arg3: memref<32x128xf32, #tpu.memory_space<vmem>>, %arg4: memref<1x128xf32, #tpu.memory_space<vmem>>, %arg5: memref<8x128xf32, #tpu.memory_space<vmem>>) attributes {dimension_semantics = [#tpu.dimension_semantics<parallel>, #tpu.dimension_semantics<parallel>], iteration_bounds = array<i64: 1, 1>, scalar_prefetch = 0 : i64, scratch_operands = 0 : i64, tpu.core_type = #tpu.core_type<tc>, window_params = [{transform_indices = @transform_0, window_bounds = array<i64: 8, 32>}, {pipeline_mode = #tpu.pipeline_mode<synchronous>, transform_indices = @transform_1, window_bounds = array<i64: 32, 128>}, {pipeline_mode = #tpu.pipeline_mode<synchronous>, transform_indices = @transform_2, window_bounds = array<i64: 1, 128>}, {transform_indices = @transform_3, window_bounds = array<i64: 8, 128>}]} {
    %c0 = arith.constant 0 : index
    %c0_0 = arith.constant 0 : index
    %0 = vector.load %arg2[%c0, %c0_0] : memref<8x32xf32, #tpu.memory_space<vmem>>, vector<8x32xf32>
    %c0_1 = arith.constant 0 : index
    %c0_2 = arith.constant 0 : index
    %1 = vector.load %arg3[%c0_1, %c0_2] : memref<32x128xf32, #tpu.memory_space<vmem>>, vector<32x128xf32>
    %cst = arith.constant dense<0.000000e+00> : vector<8x128xf32>
    %2 = tpu.matmul %0, %1, %cst {dimension_numbers = #tpu.dot_dimension_numbers<[1], [0], [0], [1], [0, 0, 1, 1], [], []>} : vector<8x32xf32>, vector<32x128xf32>, vector<8x128xf32> -> vector<8x128xf32>
    %c0_3 = arith.constant 0 : index
    %c0_4 = arith.constant 0 : index
    %3 = vector.load %arg4[%c0_3, %c0_4] : memref<1x128xf32, #tpu.memory_space<vmem>>, vector<1x128xf32>
    %4 = vector.broadcast %3 : vector<1x128xf32> to vector<8x128xf32>
    %5 = arith.addf %2, %4 : vector<8x128xf32>
    %cst_5 = arith.constant 0.000000e+00 : f32
    %6 = vector.broadcast %cst_5 : f32 to vector<8x128xf32>
    %7 = arith.maximumf %5, %6 : vector<8x128xf32>
    %c0_6 = arith.constant 0 : index
    %c0_7 = arith.constant 0 : index
    %8 = vector.load %arg5[%c0_6, %c0_7] : memref<8x128xf32, #tpu.memory_space<vmem>>, vector<8x128xf32>
    tpu.vector_store %arg5[%c0_6, %c0_7], %7 {strides = array<i32>} : memref<8x128xf32, #tpu.memory_space<vmem>>, vector<8x128xf32>,
    return
  }
  func.func @transform_0(%arg0: i32, %arg1: i32) -> (i32, i32) {
    %c0_i32 = arith.constant 0 : i32
    %c0_i32_0 = arith.constant 0 : i32
    return %arg0, %c0_i32 : i32, i32
  }
  func.func @transform_1(%arg0: i32, %arg1: i32) -> (i32, i32) {
    %c0_i32 = arith.constant 0 : i32
    %c0_i32_0 = arith.constant 0 : i32
    return %c0_i32, %arg1 : i32, i32
  }
  func.func @transform_2(%arg0: i32, %arg1: i32) -> (i32, i32) {
    %c0_i32 = arith.constant 0 : i32
    %c0_i32_0 = arith.constant 0 : i32
    return %c0_i32, %arg1 : i32, i32
  }
  func.func @transform_3(%arg0: i32, %arg1: i32) -> (i32, i32) {
    %c0_i32 = arith.constant 0 : i32
    return %arg0, %arg1 : i32, i32
  }
}

</mosaic_0001>

<bundles_post_ra>
// kernel: tpu_custom_call.1
= control target key start
LH: loop header
LB: loop body
LE: loop exit
PB: predicated region body
PF: predicated region fallthrough
CT: control target
= control target key end

     0   :  { %8 = vsyncpa [#allocation3], 0  ;;  %s220_s0 = inlined_call_operand.hbm [shape: f32[8,32], index: 0, kind: input, shape index: {}]   ;;  %s221_s1 = inlined_call_operand.hbm [shape: f32[32,128], index: 1, kind: input, shape index: {}]   ;;  %s222_s2 = inlined_call_operand.vmem [shape: f32[1,128], index: 2, kind: input, shape index: {}]   ;;  %s223_s3 = inlined_call_operand.hbm [shape: f32[8,128], index: 3, kind: output, shape index: {}]  }
   0x1   :  { %9 = vsyncpa [#allocation6], 0 }
   0x2   :  { %10 = vsyncpa [#allocation4], 0  ;;  %s16_s14 = sshll.u32 %s220_s0, 4  ;;  %s183_s15 = smov [#allocation2]   ;;  %s17_s14 = int_to_ptr.hbm [resolvable:$true] %s16_s14 }
   0x3   :  { %s18_s16 = sshll.u32 %s183_s15, 4  ;;  %s26_s19 = sshll.u32 %s221_s1, 4  ;;  %s19_s16 = int_to_ptr.vmem [resolvable:$true] %s18_s16  ;;  %s27_s19 = int_to_ptr.hbm [resolvable:$true] %s26_s19 }
   0x4   :  { %21 = dma.hbm_to_vmem [thread:$0]  %s17_s14, 128, %s19_s16, [#allocation3]  }
   0x5   :  { %s184_s20 = smov [#allocation5]   ;;  %s185_s22 = smov 128  }
   0x6   :  { %s28_s21 = sshll.u32 %s184_s20, 4  ;;  %s186_s23 = smov 8   ;;  %s29_s21 = int_to_ptr.vmem [resolvable:$true] %s28_s21 }
   0x7   :  { %34 = dma.hbm_to_vmem [thread:$0]  %s27_s19, 512, %s29_s21, [#allocation6], %s185_s22, %s185_s22, %s186_s23  }
   0x8   :  { %177 = dma.done.wait [#allocation3], 128  }
   0x9   :  { %178 = vsyncadd [#allocation3], 4294967168 }
   0xa   :  { %179 = dma.done.wait [#allocation6], 512  }
   0xb   :  { %180 = vsyncadd [#allocation6], 4294966784  ;;  %v49_v0 = vld [vmem:[#allocation5 + $0x18] sm:$0xff]  ;;  %v48_v1 = vld [vmem:[#allocation5 + $0x10] sm:$0xff]  ;;  %vm54_vm0 = vcmask 261120   ;;  %s187_s24 = smov [#allocation7]  }
   0xc   :  { %70 = vmatpush.msra.mxu0 %v49_v0  ;;  %v47_v2 = vld [vmem:[#allocation5 + $0x8] sm:$0xff]  ;;  %v46_v3 = vld [vmem:[#allocation5] sm:$0xff]  ;;  %v45_v4 = vld [vmem:[#allocation2] sm:$0xff]  ;;  %s85_s25 = sshll.u32 %s187_s24, 4  ;;  %s87_s28 = sshll.u32 %s223_s3, 4  ;;  %s86_s25 = int_to_ptr.vmem [resolvable:$true] %s85_s25  ;;  %s88_s28 = int_to_ptr.hbm [resolvable:$true] %s87_s28 }
   0xd   :  { %v104_v5 = vld [vmem:[%s222_s2] ss:$0 sm:$0xff] }
   0xe   :  { %71 = vmatpush.msra.mxu0 %v48_v1 }
  0x10   :  { %72 = vmatpush.msra.mxu0 %v47_v2 }
  0x12   :  { %73 = vmatpush.msra.mxu0 %v46_v3 }
  0x13   :  { %98 = vmatmul.msk.f32.vlgmr.msra.gmra.mxu0 %vm54_vm0, %v45_v4 }
  0x90   :  { %v75_v6 = vpop.f32.mrf.mxu0 }
  0x91   :  { %v76_v7 = vadd.f32 %v104_v5, %v75_v6 }
  0x93   :  { %v78_v8 = vmax.f32 %v76_v7, 0.0 }
  0x95   :  { %79 = vst [vmem:[#allocation7] sm:$0xff] %v78_v8 }
  0x96   :  { %90 = dma.vmem_to_hbm [thread:$0]  %s86_s25, 128, %s88_s28, [#allocation4]  }
  0x97   :  { %181 = dma.done.wait [#allocation4], 128  }
  0x98   :  { %182 = vsyncadd [#allocation4], 4294967168 }
  0x99   :  { %95 = vsyncpa [#allocation3], 1 }
  0x9a   :  { %96 = vsyncpa [#allocation6], 1 }
  0x9b   :  { %97 = vsyncpa [#allocation4], 1 }

</bundles_post_ra>
